<compile_context>
chip_gen: v7x
topology: tpu7x:2x2x1
jax: 0.10.0
libtpu: 0.0.40
codegen_flags: <defaults>
</compile_context>

<pallas_src>
import jax
import jax.numpy as jnp
from jax.experimental import pallas as pl
from jax.experimental.pallas import tpu as pltpu


def _critic_kernel(x_ref, w1_ref, b1_ref, w2_ref, b2_ref, w3_ref, b3_ref, o_ref):
    # x_ref: (tile_m, in_feats) f32 in natural layout.  Transpose to
    # batch-on-lanes and cast to bf16 in VMEM (hidden under the pipeline);
    # this keeps HBM traffic for x at a single f32 read.
    x = x_ref[...].T.astype(jnp.bfloat16)                  # (in_feats, tile_m)

    # Layer 1: (h_feats, in_feats) @ (in_feats, tile_m) -> (h_feats, tile_m)
    h1 = jnp.dot(w1_ref[...], x, preferred_element_type=jnp.float32)
    h1 = jnp.maximum(h1 + b1_ref[...], 0.0)                # f32 epilogue (v5e)
    # TODO(synk): dropout (training mode) not applied; eval semantics = identity.
    h1 = h1.astype(jnp.bfloat16)

    # Layer 2: (in_feats, h_feats) @ (h_feats, tile_m) -> (in_feats, tile_m)
    h2 = jnp.dot(w2_ref[...], h1, preferred_element_type=jnp.float32)
    h2 = jnp.maximum(h2 + b2_ref[...], 0.0)

    # Layer 3 (1-wide projection): VPU multiply + XLU sublane reduce instead of
    # an MXU matmul that would produce a single result column.
    out = jnp.sum(h2 * w3_ref[...], axis=0, keepdims=True) + b3_ref[...]
    o_ref[...] = out.astype(o_ref.dtype)                   # (1, tile_m) lane-dense


def _round_up(x, m):
    return (x + m - 1) // m * m


def _vmem_limit_bytes():
    """Per-generation VMEM limit: ~48 MiB on v7x (64 MiB physical), ~96 MiB on
    v5e/v6e (128 MiB physical)."""
    cap = 64 * 1024 * 1024  # assume the smallest (v7x per-TC) if query fails
    try:
        info = pltpu.get_tpu_info()
        cap = int(getattr(info, "vmem_capacity_bytes", cap))
    except Exception:
        pass
    return min((cap * 3) // 4, 100 * 1024 * 1024)


def _choose_tile_m(N, in_feats, h_feats, vmem_budget_bytes):
    """Largest lane-aligned batch tile that fits the VMEM budget (capped at
    8192), with >= 2 tiles for large N so v7x's 2 TensorCores both get work."""
    # VMEM bytes consumed per batch column inside one grid step.
    per_col = (
        2 * in_feats * 4        # x tile (f32), double-buffered by the pipeline
        + 2 * 8 * 4             # (1, tile) output padded to 8 sublanes, dbl-buffered
        + in_feats * 2          # in-kernel bf16 copy of x
        + h_feats * (4 + 2)     # h1 in f32 + bf16
        + 2 * in_feats * 4      # h2 (f32) + h2*w3 temp
    )
    # Resident weights/biases: constant-index inputs still get 2 buffers each,
    # and the tiny (.,1) biases pad to at least an (8,128) tile.
    weight_bytes = 2 * (
        2 * in_feats * h_feats * 2                          # w1 + w2 (bf16)
        + 4 * _round_up(max(in_feats, h_feats, 8), 8) * 128 * 4
    )
    budget = max(vmem_budget_bytes - weight_bytes, 1 << 20)
    max_tile = max(128, min(8192, (budget // per_col) // 128 * 128))

    n_pad = _round_up(N, 128)
    if n_pad <= 256:
        return min(n_pad, max_tile)
    # Prefer at least 2 tiles (v7x megacore shards the "parallel" grid axis).
    two_way = _round_up(pl.cdiv(n_pad, 2), 128)
    return max(128, min(max_tile, two_way))


def agcr_ae_critic(features, params, *, tile_m=None):
    """features: (N, in_feats) f32.  params: dict (see module docstring).

    Returns (N, 1) f32, matching the PyTorch module's forward (eval mode)."""
    features = features.astype(jnp.float32)
    N, in_feats = features.shape
    h_feats = params["w1"].shape[0]

    vmem_limit = _vmem_limit_bytes()
    if tile_m is None:
        # Leave ~half the limit as headroom for compiler scratch / bookkeeping.
        tile_m = _choose_tile_m(N, in_feats, h_feats, vmem_limit // 2)

    n_tiles = pl.cdiv(N, tile_m)
    n_pad = n_tiles * tile_m
    if n_pad != N:
        # Zero-pad only the ragged batch tail; padded columns produce finite
        # garbage that is sliced off below (no cross-lane contamination).
        features = jnp.pad(features, ((0, n_pad - N), (0, 0)))

    w1 = params["w1"].astype(jnp.bfloat16)
    w2 = params["w2"].astype(jnp.bfloat16)
    b1 = params["b1"].astype(jnp.float32)
    b2 = params["b2"].astype(jnp.float32)
    w3 = params["w3"].astype(jnp.float32)
    b3 = params["b3"].astype(jnp.float32)

    def rep(shape):
        # Constant block index -> weights/biases stay resident in VMEM.
        return pl.BlockSpec(shape, lambda i: (0, 0))

    flops = 2 * n_pad * (in_feats * h_feats + h_feats * in_feats + in_feats)
    bytes_accessed = (
        features.size * 4                     # x (f32, single HBM read)
        + (w1.size + w2.size) * 2             # bf16 weights
        + (b1.size + b2.size + w3.size + b3.size) * 4
        + n_pad * 4                           # output
    )

    out = pl.pallas_call(
        _critic_kernel,
        out_shape=jax.ShapeDtypeStruct((1, n_pad), jnp.float32),
        grid_spec=pltpu.PrefetchScalarGridSpec(
            num_scalar_prefetch=0,
            grid=(n_tiles,),
            in_specs=[
                pl.BlockSpec((tile_m, in_feats), lambda i: (i, 0)),   # x tile
                rep((h_feats, in_feats)),                             # w1
                rep((h_feats, 1)),                                    # b1
                rep((in_feats, h_feats)),                             # w2
                rep((in_feats, 1)),                                   # b2
                rep((in_feats, 1)),                                   # w3
                rep((1, 1)),                                          # b3
            ],
            out_specs=pl.BlockSpec((1, tile_m), lambda i: (0, i)),
        ),
        compiler_params=pltpu.CompilerParams(
            dimension_semantics=("parallel",),
            vmem_limit_bytes=vmem_limit,
        ),
        cost_estimate=pl.CostEstimate(
            flops=flops, transcendentals=0, bytes_accessed=bytes_accessed
        ),
    )(features, w1, b1, w2, b2, w3, b3)

    return out[0, :N].reshape(N, 1)


def init_params(key, in_feats, h_feats):
    """Deterministic init mimicking nn.Linear (uniform +/- 1/sqrt(fan_in)).

    Weights stored in PyTorch-native (out, in) orientation; biases as (out, 1)
    columns for the batch-on-lanes kernel layout."""
    ks = jax.random.split(key, 6)

    def lin(kw, kb, fan_in, fan_out):
        bound = 1.0 / jnp.sqrt(fan_in)
        w = jax.random.uniform(kw, (fan_out, fan_in), jnp.float32, -bound, bound)
        b = jax.random.uniform(kb, (fan_out, 1), jnp.float32, -bound, bound)
        return w, b

    w1, b1 = lin(ks[0], ks[1], in_feats, h_feats)     # (h, in), (h, 1)
    w2, b2 = lin(ks[2], ks[3], h_feats, in_feats)     # (in, h), (in, 1)
    w3_row, b3 = lin(ks[4], ks[5], in_feats, 1)       # (1, in), (1, 1)
    w3 = w3_row.T                                     # (in, 1) for VPU reduce
    return {"w1": w1, "b1": b1, "w2": w2, "b2": b2, "w3": w3, "b3": b3}


def _reference(features, p):
    """Pure-JAX reference with the same bf16 rounding / f32 accumulation."""
    xb = features.astype(jnp.bfloat16)
    w1 = p["w1"].astype(jnp.bfloat16)
    w2 = p["w2"].astype(jnp.bfloat16)
    h = jnp.dot(xb, w1.T, preferred_element_type=jnp.float32) + p["b1"].T
    h = jnp.maximum(h, 0.0).astype(jnp.bfloat16)
    h = jnp.dot(h, w2.T, preferred_element_type=jnp.float32) + p["b2"].T
    h = jnp.maximum(h, 0.0)
    return h @ p["w3"] + p["b3"]


if __name__ == "__main__":
    key = jax.random.PRNGKey(0)
    k_feat, k_params = jax.random.split(key)

    N, in_feats, h_feats = 8, 16, 32
    features = jax.random.normal(k_feat, (N, in_feats), jnp.float32)
    params = init_params(k_params, in_feats, h_feats)

    run = jax.jit(agcr_ae_critic)
    out = jax.block_until_ready(run(features, params))

    ref = _reference(features, params)
    assert out.shape == (N, 1), out.shape
    assert jnp.allclose(out, ref, atol=2e-4, rtol=2e-4), "mismatch vs reference"

    print("KERNEL_OK")
</pallas_src>

<mosaic_0001>
module attributes {stable_mosaic.version = 11 : i64} {
  func.func @_critic_kernel(%arg0: i32, %arg1: memref<128x16xf32, #tpu.memory_space<vmem>>, %arg2: memref<32x16xbf16, #tpu.memory_space<vmem>>, %arg3: memref<32x1xf32, #tpu.memory_space<vmem>>, %arg4: memref<16x32xbf16, #tpu.memory_space<vmem>>, %arg5: memref<16x1xf32, #tpu.memory_space<vmem>>, %arg6: memref<16x1xf32, #tpu.memory_space<vmem>>, %arg7: memref<1x1xf32, #tpu.memory_space<vmem>>, %arg8: memref<1x128xf32, #tpu.memory_space<vmem>>) attributes {dimension_semantics = [#tpu.dimension_semantics<parallel>], iteration_bounds = array<i64: 1>, scalar_prefetch = 0 : i64, scratch_operands = 0 : i64, tpu.core_type = #tpu.core_type<tc>, window_params = [{transform_indices = @transform_0, window_bounds = array<i64: 128, 16>}, {pipeline_mode = #tpu.pipeline_mode<synchronous>, transform_indices = @transform_1, window_bounds = array<i64: 32, 16>}, {pipeline_mode = #tpu.pipeline_mode<synchronous>, transform_indices = @transform_2, window_bounds = array<i64: 32, 1>}, {pipeline_mode = #tpu.pipeline_mode<synchronous>, transform_indices = @transform_3, window_bounds = array<i64: 16, 32>}, {pipeline_mode = #tpu.pipeline_mode<synchronous>, transform_indices = @transform_4, window_bounds = array<i64: 16, 1>}, {pipeline_mode = #tpu.pipeline_mode<synchronous>, transform_indices = @transform_5, window_bounds = array<i64: 16, 1>}, {pipeline_mode = #tpu.pipeline_mode<synchronous>, transform_indices = @transform_6, window_bounds = array<i64: 1, 1>}, {transform_indices = @transform_7, window_bounds = array<i64: 1, 128>}]} {
    %c0 = arith.constant 0 : index
    %c0_0 = arith.constant 0 : index
    %0 = vector.load %arg1[%c0, %c0_0] : memref<128x16xf32, #tpu.memory_space<vmem>>, vector<128x16xf32>
    %1 = tpu.transpose %0, [1, 0] : vector<128x16xf32> -> vector<16x128xf32>
    %2 = arith.truncf %1 : vector<16x128xf32> to vector<16x128xbf16>
    %c0_1 = arith.constant 0 : index
    %c0_2 = arith.constant 0 : index
    %3 = vector.load %arg2[%c0_1, %c0_2] : memref<32x16xbf16, #tpu.memory_space<vmem>>, vector<32x16xbf16>
    %cst = arith.constant dense<0.000000e+00> : vector<32x128xf32>
    %4 = tpu.matmul %3, %2, %cst {dimension_numbers = #tpu.dot_dimension_numbers<[1], [0], [0], [1], [0, 0, 1, 1], [], []>} : vector<32x16xbf16>, vector<16x128xbf16>, vector<32x128xf32> -> vector<32x128xf32>
    %c0_3 = arith.constant 0 : index
    %c0_4 = arith.constant 0 : index
    %5 = vector.load %arg3[%c0_3, %c0_4] : memref<32x1xf32, #tpu.memory_space<vmem>>, vector<32x1xf32>
    %6 = vector.broadcast %5 : vector<32x1xf32> to vector<32x128xf32>
    %7 = arith.addf %4, %6 : vector<32x128xf32>
    %cst_5 = arith.constant 0.000000e+00 : f32
    %8 = vector.broadcast %cst_5 : f32 to vector<32x128xf32>
    %9 = arith.maximumf %7, %8 : vector<32x128xf32>
    %10 = arith.truncf %9 : vector<32x128xf32> to vector<32x128xbf16>
    %c0_6 = arith.constant 0 : index
    %c0_7 = arith.constant 0 : index
    %11 = vector.load %arg4[%c0_6, %c0_7] : memref<16x32xbf16, #tpu.memory_space<vmem>>, vector<16x32xbf16>
    %cst_8 = arith.constant dense<0.000000e+00> : vector<16x128xf32>
    %12 = tpu.matmul %11, %10, %cst_8 {dimension_numbers = #tpu.dot_dimension_numbers<[1], [0], [0], [1], [0, 0, 1, 1], [], []>} : vector<16x32xbf16>, vector<32x128xbf16>, vector<16x128xf32> -> vector<16x128xf32>
    %c0_9 = arith.constant 0 : index
    %c0_10 = arith.constant 0 : index
    %13 = vector.load %arg5[%c0_9, %c0_10] : memref<16x1xf32, #tpu.memory_space<vmem>>, vector<16x1xf32>
    %14 = vector.broadcast %13 : vector<16x1xf32> to vector<16x128xf32>
    %15 = arith.addf %12, %14 : vector<16x128xf32>
    %cst_11 = arith.constant 0.000000e+00 : f32
    %16 = vector.broadcast %cst_11 : f32 to vector<16x128xf32>
    %17 = arith.maximumf %15, %16 : vector<16x128xf32>
    %c0_12 = arith.constant 0 : index
    %c0_13 = arith.constant 0 : index
    %18 = vector.load %arg6[%c0_12, %c0_13] : memref<16x1xf32, #tpu.memory_space<vmem>>, vector<16x1xf32>
    %19 = vector.broadcast %18 : vector<16x1xf32> to vector<16x128xf32>
    %20 = arith.mulf %17, %19 : vector<16x128xf32>
    %cst_14 = arith.constant dense<0.000000e+00> : vector<128xf32>
    %21 = vector.multi_reduction <add>, %20, %cst_14 [0] : vector<16x128xf32> to vector<128xf32>
    %22 = vector.shape_cast %21 : vector<128xf32> to vector<1x128xf32>
    %c0_15 = arith.constant 0 : index
    %c0_16 = arith.constant 0 : index
    %23 = vector.load %arg7[%c0_15, %c0_16] : memref<1x1xf32, #tpu.memory_space<vmem>>, vector<1x1xf32>
    %24 = vector.broadcast %23 : vector<1x1xf32> to vector<1x128xf32>
    %25 = arith.addf %22, %24 : vector<1x128xf32>
    %c0_17 = arith.constant 0 : index
    %c0_18 = arith.constant 0 : index
    %26 = vector.load %arg8[%c0_17, %c0_18] : memref<1x128xf32, #tpu.memory_space<vmem>>, vector<1x128xf32>
    tpu.vector_store %arg8[%c0_17, %c0_18], %25 {strides = array<i32>} : memref<1x128xf32, #tpu.memory_space<vmem>>, vector<1x128xf32>,
    return
  }
  func.func @transform_0(%arg0: i32) -> (i32, i32) {
    %c0_i32 = arith.constant 0 : i32
    %c0_i32_0 = arith.constant 0 : i32
    return %arg0, %c0_i32 : i32, i32
  }
  func.func @transform_1(%arg0: i32) -> (i32, i32) {
    %c0_i32 = arith.constant 0 : i32
    %c0_i32_0 = arith.constant 0 : i32
    %c0_i32_1 = arith.constant 0 : i32
    return %c0_i32, %c0_i32_0 : i32, i32
  }
  func.func @transform_2(%arg0: i32) -> (i32, i32) {
    %c0_i32 = arith.constant 0 : i32
    %c0_i32_0 = arith.constant 0 : i32
    %c0_i32_1 = arith.constant 0 : i32
    return %c0_i32, %c0_i32_0 : i32, i32
  }
  func.func @transform_3(%arg0: i32) -> (i32, i32) {
    %c0_i32 = arith.constant 0 : i32
    %c0_i32_0 = arith.constant 0 : i32
    %c0_i32_1 = arith.constant 0 : i32
    return %c0_i32, %c0_i32_0 : i32, i32
  }
  func.func @transform_4(%arg0: i32) -> (i32, i32) {
    %c0_i32 = arith.constant 0 : i32
    %c0_i32_0 = arith.constant 0 : i32
    %c0_i32_1 = arith.constant 0 : i32
    return %c0_i32, %c0_i32_0 : i32, i32
  }
  func.func @transform_5(%arg0: i32) -> (i32, i32) {
    %c0_i32 = arith.constant 0 : i32
    %c0_i32_0 = arith.constant 0 : i32
    %c0_i32_1 = arith.constant 0 : i32
    return %c0_i32, %c0_i32_0 : i32, i32
  }
  func.func @transform_6(%arg0: i32) -> (i32, i32) {
    %c0_i32 = arith.constant 0 : i32
    %c0_i32_0 = arith.constant 0 : i32
    %c0_i32_1 = arith.constant 0 : i32
    return %c0_i32, %c0_i32_0 : i32, i32
  }
  func.func @transform_7(%arg0: i32) -> (i32, i32) {
    %c0_i32 = arith.constant 0 : i32
    %c0_i32_0 = arith.constant 0 : i32
    return %c0_i32, %arg0 : i32, i32
  }
}

</mosaic_0001>

<bundles_post_ra>
// kernel: agcr_ae_critic.1
= control target key start
LH: loop header
LB: loop body
LE: loop exit
PB: predicated region body
PF: predicated region fallthrough
CT: control target
= control target key end

     0   :  { %vm116_vm0 = vcmask 130048   ;;  %v315_v5 = vmov 0   ;;  %v316_v32 = vmov 0.0   ;;  %vm317_vm1 = vmmov 0   ;;  %s447_s0 = inlined_call_operand.vmem [shape: f32[128,16], index: 0, kind: input, shape index: {}]   ;;  %s448_s1 = inlined_call_operand.vmem [shape: bf16[32,16], index: 1, kind: input, shape index: {}]   ;;  %s449_s2 = inlined_call_operand.vmem [shape: f32[32,1], index: 2, kind: input, shape index: {}]   ;;  %s450_s6 = inlined_call_operand.<no memory space> [shape: f32[1,1], index: 6, kind: input, shape index: {}]   ;;  %s451_s4 = inlined_call_operand.vmem [shape: f32[16,1], index: 4, kind: input, shape index: {}]   ;;  %s452_s5 = inlined_call_operand.vmem [shape: f32[16,1], index: 5, kind: input, shape index: {}]   ;;  %s453_s3 = inlined_call_operand.vmem [shape: bf16[16,32], index: 3, kind: input, shape index: {}]   ;;  %s454_s7 = inlined_call_operand.vmem [shape: f32[1,128], index: 7, kind: output, shape index: {}]  }
   0x1   :  { %v29_v0 = vld [vmem:[%s447_s0] sm:$0xff]  ;;  %v30_v1 = vld [vmem:[%s447_s0 + $0x8] sm:$0xff]  ;;  %v31_v2 = vld [vmem:[%s447_s0 + $0x10] sm:$0xff]  ;;  %310 = vset.pattern.permute.xlu1 %v315_v5  ;;  %v12_v7 = vstv %s450_s6  ;;  %299 = vmatprep.subr.bf16.mxu1 %v316_v32  ;;  %vm197_vm2 = vcmask 261120  }
   0x2   :  { %45 = vxpose.xlu0.b32.start [1/16] (narrow) %v29_v0, 16  ;;  %v312_v3 = vld [vmem:[%s448_s1] sm:$0xff]   ;;  %v32_v4 = vld [vmem:[%s447_s0 + $0x18] sm:$0xff]  ;;  %13 = vst [vmem:[#allocation2] sm:$0x1] %v12_v7  ;;  %v83_v9 = vld [vmem:[%s449_s2 + $0x8] sm:$0xff]  ;;  %303 = vmatprep.mubr.msk.bf16.mxu1 %vm317_vm1, %v316_v32 }
   0x3   :  { %295 = vmatprep.mubr.msk.bf16.mxu0 %vm116_vm0, %v312_v3  ;;  %v82_v6 = vld [vmem:[%s449_s2] sm:$0xff]  ;;  %v34_v10 = vld [vmem:[%s447_s0 + $0x28] sm:$0xff]  ;;  %v84_v11 = vld [vmem:[%s449_s2 + $0x10] sm:$0xff] }
   0x4   :  { %v33_v8 = vld [vmem:[%s447_s0 + $0x20] sm:$0xff]  ;;  %88 = vperm.xlu1 %310, %v82_v6   ;;  %v35_v12 = vld [vmem:[%s447_s0 + $0x30] sm:$0xff]  ;;  %v85_v13 = vld [vmem:[%s449_s2 + $0x18] sm:$0xff] }
   0x5   :  { %v36_v14 = vld [vmem:[%s447_s0 + $0x38] sm:$0xff]  ;;  %v180_v15 = vld [vmem:[%s451_s4] sm:$0xff]  ;;  %v181_v17 = vld [vmem:[%s451_s4 + $0x8] sm:$0xff] }
   0x6   :  { %46 = vxpose.xlu0.b32.cont [2/16] (narrow) %v30_v1, 16  ;;  %v37_v16 = vld [vmem:[%s447_s0 + $0x40] sm:$0xff]  ;;  %v38_v18 = vld [vmem:[%s447_s0 + $0x48] sm:$0xff]  ;;  %v39_v20 = vld [vmem:[%s447_s0 + $0x50] sm:$0xff] }
   0x7   :  { %v244_v19 = vld [vmem:[%s452_s5] sm:$0xff]  ;;  %v245_v21 = vld [vmem:[%s452_s5 + $0x8] sm:$0xff]  ;;  %v40_v22 = vld [vmem:[%s447_s0 + $0x58] sm:$0xff] }
   0x8   :  { %93 = vperm.xlu1 %310, %v83_v9   ;;  %v41_v24 = vld [vmem:[%s447_s0 + $0x60] sm:$0xff]  ;;  %v42_v25 = vld [vmem:[%s447_s0 + $0x68] sm:$0xff]  ;;  %v43_v26 = vld [vmem:[%s447_s0 + $0x70] sm:$0xff] }
   0x9   :  { %v265_v23 = vld [vmem:[#allocation2] sm:$0x1]  ;;  %v44_v27 = vld [vmem:[%s447_s0 + $0x78] sm:$0xff]  ;;  %v313_v31 = vld [vmem:[%s448_s1 + $0x8] sm:$0xff]  }
   0xa   :  { %47 = vxpose.xlu0.b32.cont [3/16] (narrow) %v31_v2, 16  ;;  %v314_v51 = vld [vmem:[%s453_s3] sm:$0xff]   ;;  %v271_v2 = vlaneseq }
   0xc   :  { %98 = vperm.xlu1 %310, %v84_v11  }
   0xe   :  { %48 = vxpose.xlu0.b32.cont [4/16] (narrow) %v32_v4, 16 }
  0x10   :  { %103 = vperm.xlu1 %310, %v85_v13  }
  0x12   :  { %49 = vxpose.xlu0.b32.cont [5/16] (narrow) %v33_v8, 16 }
  0x14   :  { %184 = vperm.xlu1 %310, %v180_v15  }
  0x16   :  { %50 = vxpose.xlu0.b32.cont [6/16] (narrow) %v34_v10, 16 }
  0x18   :  { %189 = vperm.xlu1 %310, %v181_v17  }
  0x1a   :  { %51 = vxpose.xlu0.b32.cont [7/16] (narrow) %v35_v12, 16 }
  0x1c   :  { %248 = vperm.xlu1 %310, %v244_v19  }
  0x1e   :  { %52 = vxpose.xlu0.b32.cont [8/16] (narrow) %v36_v14, 16 }
  0x20   :  { %253 = vperm.xlu1 %310, %v245_v21  }
  0x22   :  { %53 = vxpose.xlu0.b32.cont [9/16] (narrow) %v37_v16, 16 }
  0x24   :  { %268 = vperm.xlu1 %310, %v265_v23  }
  0x26   :  { %54 = vxpose.xlu0.b32.cont [10/16] (narrow) %v38_v18, 16 }
  0x2a   :  { %55 = vxpose.xlu0.b32.cont [11/16] (narrow) %v39_v20, 16 }
  0x2e   :  { %56 = vxpose.xlu0.b32.cont [12/16] (narrow) %v40_v22, 16 }
  0x32   :  { %57 = vxpose.xlu0.b32.cont [13/16] (narrow) %v41_v24, 16 }
  0x36   :  { %58 = vxpose.xlu0.b32.cont [14/16] (narrow) %v42_v25, 16 }
  0x3a   :  { %59 = vxpose.xlu0.b32.cont [15/16] (narrow) %v43_v26, 16 }
  0x3e   :  { %60 = vxpose.xlu0.b32.end [16/16] (narrow) %v44_v27, 16 }
  0x67   :  { %311 = vset.pattern.permute.xlu0 %v315_v5  ;;  %v272_v5 = vshrl.u32 %v271_v2, 7 }
  0x69   :  { %v273_v8 = vsub.s32 0, %v272_v5 }
  0x82   :  { %v61_v28 = vpop.trf.xlu0 }
  0x83   :  { %v89_v33 = vpop.permute.xlu1 %88 }
  0x86   :  { %v62_v29 = vpop.trf.xlu0 }
  0x87   :  { %v77_v30 = vpack.c.bf16 %v62_v29, %v61_v28  ;;  %v94_v34 = vpop.permute.xlu1 %93 }
  0x89   :  { %293 = vmatprep.subr.bf16.mxu0 %v77_v30 }
  0x8a   :  { %294 = vmatpush3.bf16.msra.mxu0 %v77_v30 }
  0x8b   :  { %v99_v35 = vpop.permute.xlu1 %98 }
  0x8d   :  { %296 = vmatmul.mubr.msk.bf16.vlgmr.msra.gmra.mrb[0].mxu0 %vm116_vm0, %v313_v31 }
  0x8f   :  { %v104_v39 = vpop.permute.xlu1 %103 }
  0x93   :  { %v185_v52 = vpop.permute.xlu1 %184 }
  0x97   :  { %v190_v53 = vpop.permute.xlu1 %189 }
  0x9b   :  { %v249_v54 = vpop.permute.xlu1 %248 }
  0x9f   :  { %v254_v63 = vpop.permute.xlu1 %253 }
  0xa3   :  { %v269_v10 = vpop.permute.xlu1 %268 }
  0xa4   :  { %v274_v12 = vrot.slane %v269_v10, %v273_v8 }
 0x160   :  { %v297_v36 = vpop.f32.mrb[0].mxu0 }
 0x161   :  { %v166_v37 = vadd.f32 %v297_v36, %v99_v35  ;;  %v157_v38 = vpop.f32.mrb[1].mxu0 }
 0x162   :  { %v158_v40 = vadd.f32 %v157_v38, %v89_v33  ;;  %v298_v41 = vpop.f32.mrb[2].mxu0 }
 0x163   :  { %v169_v42 = vadd.f32 %v298_v41, %v104_v39  ;;  %v160_v43 = vpop.f32.mrb[3].mxu0  ;;  %v174_v45 = vmax.f32 %v166_v37, 0.0 }
 0x164   :  { %v161_v44 = vadd.f32 %v160_v43, %v94_v34  ;;  %v172_v47 = vmax.f32 %v158_v40, 0.0 }
 0x165   :  { %v175_v46 = vmax.f32 %v169_v42, 0.0 }
 0x166   :  { %v173_v48 = vmax.f32 %v161_v44, 0.0 }
 0x167   :  { %v177_v49 = vpack.c.bf16 %v175_v46, %v174_v45 }
 0x168   :  { %v176_v50 = vpack.c.bf16 %v173_v48, %v172_v47 }
 0x16a   :  { %300 = vmatpush3.bf16.msra.mxu1 %v176_v50 }
 0x16b   :  { %301 = vmatprep.subr.bf16.mxu1 %v316_v32 }
 0x16e   :  { %302 = vmatpush3.bf16.msra.mxu1 %v177_v49 }
 0x171   :  { %304 = vmatmul.mubr.msk.bf16.vlgmr.msra.gmra.mrb[0].mxu1 %vm197_vm2, %v314_v51 }
 0x244   :  { %v235_v55 = vpop.f32.mrb[0].mxu1 }
 0x245   :  { %v236_v56 = vadd.f32 %v235_v55, %v185_v52  ;;  %v305_v57 = vpop.f32.mrb[1].mxu1 }
 0x246   :  { %v238_v58 = vpop.f32.mrb[2].mxu1 }
 0x247   :  { %v242_v59 = vmax.f32 %v236_v56, 0.0  ;;  %v239_v60 = vadd.f32 %v238_v58, %v190_v53  ;;  %v306_v61 = vpop.f32.mrb[3].mxu1 }
 0x249   :  { %v243_v62 = vmax.f32 %v239_v60, 0.0  ;;  %v256_v0 = vmul.f32 %v249_v54, %v242_v59 }
 0x24b   :  { %v257_v1 = vmul.f32 %v254_v63, %v243_v62 }
 0x24d   :  { %v258_v3 = vadd.f32 %v257_v1, %v256_v0 }
 0x24f   :  { %v259_v4 = vrot.slane %v258_v3, 4 }
 0x251   :  { %v260_v6 = vadd.f32 %v259_v4, %v258_v3 }
 0x253   :  { %v261_v7 = vrot.slane %v260_v6, 2 }
 0x255   :  { %v262_v9 = vadd.f32 %v261_v7, %v260_v6 }
 0x257   :  { %v263_v11 = vrot.slane %v262_v9, 1 }
 0x259   :  { %v264_v13 = vadd.f32 %v263_v11, %v262_v9 }
 0x25b   :  { %v275_v14 = vadd.f32 %v274_v12, %v264_v13 }
 0x25d   :  { %276 = vst [vmem:[%s454_s7] sm:$0x1] %v275_v14 }

</bundles_post_ra>
